<compile_context>
chip_gen: v7x
topology: tpu7x:2x2x1
jax: 0.10.0
libtpu: 0.0.40
codegen_flags: <defaults>
</compile_context>

<pallas_src>
import functools

import jax
import jax.numpy as jnp
from jax import lax
from jax.experimental import pallas as pl
from jax.experimental.pallas import tpu as pltpu


_UNROLL_MAX_LAYERS = 4   # static unroll up to this many hidden layers; fori_loop beyond
_BN_EPS = 1e-5


def _round_up(x, m):
    return (x + m - 1) // m * m


def _cdiv(a, b):
    return (a + b - 1) // b


def _choose_row_tile(n):
    """Batch row tile: multiple of 16 (bf16 sublane packing); ~256-512 rows for large N
    (256-wide v6e/v7x MXU, fewer per-step overheads); even step count so the v7x
    2-TensorCore 'parallel' sharding stays balanced."""
    if n <= 128:
        return _round_up(n, 16)
    steps = _cdiv(n, 512)
    steps += steps % 2
    steps = max(steps, 2)
    return _round_up(_cdiv(n, steps), 16)


def _mlp_kernel(n_hidden, x_ref, w_in_ref, b_in_ref, w_hid_ref, shift_ref,
                w_out_ref, b_out_ref, o_ref):
    """One batch tile of the full forward pass.

    Block shapes (per grid step):
      x:      [TN, Ip]    bf16   (Ip = true input width rounded to 16, NOT 128-padded)
      w_in:   [Ip, Hp]    bf16   b_in:  [1, Hp]  f32
      w_hid:  [L, Hp, Hp] bf16   (eval-BN scale folded into output columns)
      shift:  [L, 1, Hp]  f32    (= b_hid * bn_scale + bn_shift)
      w_out:  [Hp, Op]    bf16   b_out: [1, Op]  f32
      o:      [TN, Op]    f32    (lane-dense store; wrapper slices back to O)
    """
    # Input layer: Linear + ReLU. bf16 operands, f32 MXU accumulation; the bf16
    # downcast is fused into the bias+ReLU VPU pass (halves activation footprint).
    h = jnp.dot(x_ref[...], w_in_ref[...], preferred_element_type=jnp.float32)
    h = jnp.maximum(h + b_in_ref[...], 0.0).astype(jnp.bfloat16)

    # Hidden blocks: Dropout(eval = identity) -> Linear(+bias+BN folded) -> ReLU.
    def layer(hh, w, s):
        a = jnp.dot(hh, w, preferred_element_type=jnp.float32)
        return jnp.maximum(a + s, 0.0).astype(jnp.bfloat16)

    if n_hidden <= _UNROLL_MAX_LAYERS:
        for l in range(n_hidden):                          # small compile-time unroll
            h = layer(h, w_hid_ref[l], shift_ref[l])
    else:
        # Many layers: bounded loop body with dynamic leading-axis weight indexing.
        h = lax.fori_loop(
            0, n_hidden, lambda l, hh: layer(hh, w_hid_ref[l], shift_ref[l]), h)

    # Output layer: Linear, lane-dense padded f32 store.
    out = jnp.dot(h, w_out_ref[...], preferred_element_type=jnp.float32)
    o_ref[...] = (out + b_out_ref[...]).astype(o_ref.dtype)


def prepare_params(params, *, n_hidden, eps=_BN_EPS):
    """One-time parameter glue (hoisted out of the per-call path): fold eval-mode
    BatchNorm + hidden bias, cast matmul weights to bf16, pad feature dims."""
    I, H = params["w_in"].shape
    O = params["w_out"].shape[1]

    inv_std = lax.rsqrt(params["bn_var"] + eps)                    # [L, 1, H]
    bn_scale = params["bn_gamma"] * inv_std
    bn_shift = params["bn_beta"] - params["bn_mean"] * bn_scale
    w_hid_f = params["w_hid"] * bn_scale            # BN scale folded into output cols
    shift = params["b_hid"] * bn_scale + bn_shift   # bias + BN shift folded

    # H/O: lane-dense (128), 256-aligned when >= 256 to match the 256-wide v6e/v7x MXU.
    # I: only bf16 sublane packing (16) -- no 128-wide pad of the input features.
    def lane_pad(d):
        return _round_up(d, 256) if d >= 256 else _round_up(d, 128)

    Ip = _round_up(I, 16)
    Hp = lane_pad(H)
    Op = lane_pad(O)
    L = max(n_hidden, 1)

    def pad2(a, r, c, dtype):
        a = a.astype(dtype)
        if a.shape == (r, c):
            return a
        return jnp.zeros((r, c), dtype).at[:a.shape[0], :a.shape[1]].set(a)

    def pad3(a, shape, dtype):
        a = a.astype(dtype)
        if a.shape == shape:
            return a
        return jnp.zeros(shape, dtype).at[:a.shape[0], :a.shape[1], :a.shape[2]].set(a)

    return dict(
        w_in=pad2(params["w_in"], Ip, Hp, jnp.bfloat16),
        b_in=pad2(params["b_in"], 1, Hp, jnp.float32),
        w_hid=pad3(w_hid_f, (L, Hp, Hp), jnp.bfloat16),
        shift=pad3(shift, (L, 1, Hp), jnp.float32),
        w_out=pad2(params["w_out"], Hp, Op, jnp.bfloat16),
        b_out=pad2(params["b_out"], 1, Op, jnp.float32),
        dims=(I, Ip, H, Hp, O, Op),
        n_hidden=n_hidden,
    )


def neural_network_forward(x, prep):
    """Eval-mode forward using parameters prepared once by `prepare_params`."""
    N, I = x.shape
    I0, Ip, H, Hp, O, Op = prep["dims"]
    assert I == I0, "input feature width does not match prepared parameters"
    n_hidden = prep["n_hidden"]
    L = prep["w_hid"].shape[0]

    TN = _choose_row_tile(N)
    Np = _round_up(N, TN)

    # Only batch rows (and, for odd I, a few feature columns) are padded.
    x_bf = x.astype(jnp.bfloat16)
    if (Np, Ip) != (N, I):
        x_bf = jnp.zeros((Np, Ip), jnp.bfloat16).at[:N, :I].set(x_bf)

    # Explicit VMEM budget: single-buffered resident weights + double-buffered
    # x/out tiles + headroom (default scoped limits are only 16/32 MiB).
    resident = sum(int(prep[k].nbytes)
                   for k in ("w_in", "b_in", "w_hid", "shift", "w_out", "b_out"))
    streamed = 2 * (TN * Ip * 2 + TN * Op * 4)
    vmem_limit = int(min(max((resident + streamed) * 3 // 2 + (4 << 20), 32 << 20),
                         64 << 20))

    def resident_spec(shape):
        zeros = (0,) * len(shape)
        # Constant index_map -> stays VMEM-resident across grid steps; Buffered(1)
        # drops the pointless second buffer (halves weight VMEM).
        return pl.BlockSpec(shape, lambda i: zeros, pipeline_mode=pl.Buffered(1))

    kernel = functools.partial(_mlp_kernel, n_hidden)

    out_p = pl.pallas_call(
        kernel,
        out_shape=jax.ShapeDtypeStruct((Np, Op), jnp.float32),
        grid=(Np // TN,),
        in_specs=[
            pl.BlockSpec((TN, Ip), lambda i: (i, 0)),      # batch-tiled input (2-buf)
            resident_spec((Ip, Hp)),
            resident_spec((1, Hp)),
            resident_spec((L, Hp, Hp)),
            resident_spec((L, 1, Hp)),
            resident_spec((Hp, Op)),
            resident_spec((1, Op)),
        ],
        out_specs=pl.BlockSpec((TN, Op), lambda i: (i, 0)),    # lane-dense store
        compiler_params=pltpu.CompilerParams(
            dimension_semantics=("parallel",),    # megacore-shard the batch axis (v7x)
            vmem_limit_bytes=vmem_limit),
    )(x_bf, prep["w_in"], prep["b_in"], prep["w_hid"], prep["shift"],
      prep["w_out"], prep["b_out"])

    return out_p[:N, :O]


def init_params(key, input_size, hidden_size, output_size, n_hidden):
    """Deterministic synthetic parameters (Linear weights stored as [in, out]).
    BatchNorm stats/affine are perturbed away from the PyTorch defaults so the
    eval-mode BN folding is actually exercised by the checks."""
    ks = jax.random.split(key, 10)
    s = 0.1
    w_in = s * jax.random.normal(ks[0], (input_size, hidden_size), jnp.float32)
    b_in = s * jax.random.normal(ks[1], (1, hidden_size), jnp.float32)
    w_hid = s * jax.random.normal(ks[2], (n_hidden, hidden_size, hidden_size), jnp.float32)
    b_hid = s * jax.random.normal(ks[3], (n_hidden, 1, hidden_size), jnp.float32)
    w_out = s * jax.random.normal(ks[4], (hidden_size, output_size), jnp.float32)
    b_out = s * jax.random.normal(ks[5], (1, output_size), jnp.float32)
    bn_shape = (n_hidden, 1, hidden_size)
    bn_gamma = 1.0 + s * jax.random.normal(ks[6], bn_shape, jnp.float32)
    bn_beta = s * jax.random.normal(ks[7], bn_shape, jnp.float32)
    bn_mean = s * jax.random.normal(ks[8], bn_shape, jnp.float32)
    bn_var = jax.random.uniform(ks[9], bn_shape, jnp.float32, 0.5, 1.5)
    return dict(w_in=w_in, b_in=b_in, w_hid=w_hid, b_hid=b_hid,
                w_out=w_out, b_out=b_out,
                bn_gamma=bn_gamma, bn_beta=bn_beta, bn_mean=bn_mean, bn_var=bn_var)


def reference_forward(x, params, *, n_hidden, eps=_BN_EPS):
    """Pure-JAX f32 reference mirroring the eval-mode PyTorch forward."""
    h = jnp.maximum(x @ params["w_in"] + params["b_in"], 0.0)
    for l in range(n_hidden):
        h = h @ params["w_hid"][l] + params["b_hid"][l]
        h = (h - params["bn_mean"][l]) / jnp.sqrt(params["bn_var"][l] + eps)
        h = h * params["bn_gamma"][l] + params["bn_beta"][l]
        h = jnp.maximum(h, 0.0)
    return h @ params["w_out"] + params["b_out"]


if __name__ == "__main__":
    input_size, hidden_size, output_size = 32, 32, 8
    atol = rtol = 2e-2   # bf16 operands / f32 accumulation vs the f32 reference

    key = jax.random.PRNGKey(0)
    k_x1, k_x2, k_p1, k_p2 = jax.random.split(key, 4)

    # --- Config 1: n_hidden=2 (static-unroll layer path) ------------------------------
    n_hidden = 2
    params = init_params(k_p1, input_size, hidden_size, output_size, n_hidden)
    prep = prepare_params(params, n_hidden=n_hidden)   # one-time parameter glue

    # Small batch: single grid step.
    x = jax.random.normal(k_x1, (8, input_size), jnp.float32)
    out = jax.block_until_ready(neural_network_forward(x, prep))
    ref = reference_forward(x, params, n_hidden=n_hidden)
    assert out.shape == (8, output_size)
    assert jnp.allclose(out, ref, atol=atol, rtol=rtol), "Pallas kernel mismatch (small batch)"

    # Ragged larger batch: an even 2-step grid (160-row tiles) exercising pipelining
    # and the v7x megacore balance rule.
    x2 = jax.random.normal(k_x2, (300, input_size), jnp.float32)
    out2 = jax.block_until_ready(neural_network_forward(x2, prep))
    ref2 = reference_forward(x2, params, n_hidden=n_hidden)
    assert out2.shape == (300, output_size)
    assert jnp.allclose(out2, ref2, atol=atol, rtol=rtol), "Pallas kernel mismatch (batched grid)"

    # --- Config 2: n_hidden=6 exercises the in-kernel fori_loop layer path ------------
    n_hidden_deep = 6
    params6 = init_params(k_p2, input_size, hidden_size, output_size, n_hidden_deep)
    prep6 = prepare_params(params6, n_hidden=n_hidden_deep)
    out6 = jax.block_until_ready(neural_network_forward(x, prep6))
    ref6 = reference_forward(x, params6, n_hidden=n_hidden_deep)
    assert out6.shape == (8, output_size)
    assert jnp.allclose(out6, ref6, atol=atol, rtol=rtol), "Pallas kernel mismatch (fori_loop layers)"

    print("KERNEL_OK")
</pallas_src>

<mosaic_0001>
module attributes {stable_mosaic.version = 11 : i64} {
  func.func @_mlp_kernel(%arg0: i32, %arg1: memref<16x32xbf16, #tpu.memory_space<vmem>>, %arg2: memref<32x128xbf16, #tpu.memory_space<vmem>>, %arg3: memref<1x128xf32, #tpu.memory_space<vmem>>, %arg4: memref<2x128x128xbf16, #tpu.memory_space<vmem>>, %arg5: memref<2x1x128xf32, #tpu.memory_space<vmem>>, %arg6: memref<128x128xbf16, #tpu.memory_space<vmem>>, %arg7: memref<1x128xf32, #tpu.memory_space<vmem>>, %arg8: memref<16x128xf32, #tpu.memory_space<vmem>>) attributes {dimension_semantics = [#tpu.dimension_semantics<parallel>], iteration_bounds = array<i64: 1>, scalar_prefetch = 0 : i64, scratch_operands = 0 : i64, tpu.core_type = #tpu.core_type<tc>, window_params = [{transform_indices = @transform_0, window_bounds = array<i64: 16, 32>}, {pipeline_mode = #tpu.pipeline_mode<synchronous>, transform_indices = @transform_1, window_bounds = array<i64: 32, 128>}, {pipeline_mode = #tpu.pipeline_mode<synchronous>, transform_indices = @transform_2, window_bounds = array<i64: 1, 128>}, {pipeline_mode = #tpu.pipeline_mode<synchronous>, transform_indices = @transform_3, window_bounds = array<i64: 2, 128, 128>}, {pipeline_mode = #tpu.pipeline_mode<synchronous>, transform_indices = @transform_4, window_bounds = array<i64: 2, 1, 128>}, {pipeline_mode = #tpu.pipeline_mode<synchronous>, transform_indices = @transform_5, window_bounds = array<i64: 128, 128>}, {pipeline_mode = #tpu.pipeline_mode<synchronous>, transform_indices = @transform_6, window_bounds = array<i64: 1, 128>}, {transform_indices = @transform_7, window_bounds = array<i64: 16, 128>}]} {
    %c0 = arith.constant 0 : index
    %c0_0 = arith.constant 0 : index
    %0 = vector.load %arg1[%c0, %c0_0] : memref<16x32xbf16, #tpu.memory_space<vmem>>, vector<16x32xbf16>
    %c0_1 = arith.constant 0 : index
    %c0_2 = arith.constant 0 : index
    %1 = vector.load %arg2[%c0_1, %c0_2] : memref<32x128xbf16, #tpu.memory_space<vmem>>, vector<32x128xbf16>
    %cst = arith.constant dense<0.000000e+00> : vector<16x128xf32>
    %2 = tpu.matmul %0, %1, %cst {dimension_numbers = #tpu.dot_dimension_numbers<[1], [0], [0], [1], [0, 0, 1, 1], [], []>} : vector<16x32xbf16>, vector<32x128xbf16>, vector<16x128xf32> -> vector<16x128xf32>
    %c0_3 = arith.constant 0 : index
    %c0_4 = arith.constant 0 : index
    %3 = vector.load %arg3[%c0_3, %c0_4] : memref<1x128xf32, #tpu.memory_space<vmem>>, vector<1x128xf32>
    %4 = vector.broadcast %3 : vector<1x128xf32> to vector<16x128xf32>
    %5 = arith.addf %2, %4 : vector<16x128xf32>
    %cst_5 = arith.constant 0.000000e+00 : f32
    %6 = vector.broadcast %cst_5 : f32 to vector<16x128xf32>
    %7 = arith.maximumf %5, %6 : vector<16x128xf32>
    %8 = arith.truncf %7 : vector<16x128xf32> to vector<16x128xbf16>
    %c0_6 = arith.constant 0 : index
    %c0_7 = arith.constant 0 : index
    %c0_8 = arith.constant 0 : index
    %9 = vector.load %arg4[%c0_6, %c0_7, %c0_8] : memref<2x128x128xbf16, #tpu.memory_space<vmem>>, vector<1x128x128xbf16>
    %10 = vector.shape_cast %9 : vector<1x128x128xbf16> to vector<128x128xbf16>
    %c0_9 = arith.constant 0 : index
    %c0_10 = arith.constant 0 : index
    %c0_11 = arith.constant 0 : index
    %11 = vector.load %arg5[%c0_9, %c0_10, %c0_11] : memref<2x1x128xf32, #tpu.memory_space<vmem>>, vector<1x1x128xf32>
    %12 = vector.shape_cast %11 : vector<1x1x128xf32> to vector<1x128xf32>
    %cst_12 = arith.constant dense<0.000000e+00> : vector<16x128xf32>
    %13 = tpu.matmul %8, %10, %cst_12 {dimension_numbers = #tpu.dot_dimension_numbers<[1], [0], [0], [1], [0, 0, 1, 1], [], []>} : vector<16x128xbf16>, vector<128x128xbf16>, vector<16x128xf32> -> vector<16x128xf32>
    %14 = vector.broadcast %12 : vector<1x128xf32> to vector<16x128xf32>
    %15 = arith.addf %13, %14 : vector<16x128xf32>
    %cst_13 = arith.constant 0.000000e+00 : f32
    %16 = vector.broadcast %cst_13 : f32 to vector<16x128xf32>
    %17 = arith.maximumf %15, %16 : vector<16x128xf32>
    %18 = arith.truncf %17 : vector<16x128xf32> to vector<16x128xbf16>
    %c1 = arith.constant 1 : index
    %c0_14 = arith.constant 0 : index
    %c0_15 = arith.constant 0 : index
    %19 = vector.load %arg4[%c1, %c0_14, %c0_15] : memref<2x128x128xbf16, #tpu.memory_space<vmem>>, vector<1x128x128xbf16>
    %20 = vector.shape_cast %19 : vector<1x128x128xbf16> to vector<128x128xbf16>
    %c1_16 = arith.constant 1 : index
    %c0_17 = arith.constant 0 : index
    %c0_18 = arith.constant 0 : index
    %21 = vector.load %arg5[%c1_16, %c0_17, %c0_18] : memref<2x1x128xf32, #tpu.memory_space<vmem>>, vector<1x1x128xf32>
    %22 = vector.shape_cast %21 : vector<1x1x128xf32> to vector<1x128xf32>
    %cst_19 = arith.constant dense<0.000000e+00> : vector<16x128xf32>
    %23 = tpu.matmul %18, %20, %cst_19 {dimension_numbers = #tpu.dot_dimension_numbers<[1], [0], [0], [1], [0, 0, 1, 1], [], []>} : vector<16x128xbf16>, vector<128x128xbf16>, vector<16x128xf32> -> vector<16x128xf32>
    %24 = vector.broadcast %22 : vector<1x128xf32> to vector<16x128xf32>
    %25 = arith.addf %23, %24 : vector<16x128xf32>
    %cst_20 = arith.constant 0.000000e+00 : f32
    %26 = vector.broadcast %cst_20 : f32 to vector<16x128xf32>
    %27 = arith.maximumf %25, %26 : vector<16x128xf32>
    %28 = arith.truncf %27 : vector<16x128xf32> to vector<16x128xbf16>
    %c0_21 = arith.constant 0 : index
    %c0_22 = arith.constant 0 : index
    %29 = vector.load %arg6[%c0_21, %c0_22] : memref<128x128xbf16, #tpu.memory_space<vmem>>, vector<128x128xbf16>
    %cst_23 = arith.constant dense<0.000000e+00> : vector<16x128xf32>
    %30 = tpu.matmul %28, %29, %cst_23 {dimension_numbers = #tpu.dot_dimension_numbers<[1], [0], [0], [1], [0, 0, 1, 1], [], []>} : vector<16x128xbf16>, vector<128x128xbf16>, vector<16x128xf32> -> vector<16x128xf32>
    %c0_24 = arith.constant 0 : index
    %c0_25 = arith.constant 0 : index
    %31 = vector.load %arg7[%c0_24, %c0_25] : memref<1x128xf32, #tpu.memory_space<vmem>>, vector<1x128xf32>
    %32 = vector.broadcast %31 : vector<1x128xf32> to vector<16x128xf32>
    %33 = arith.addf %30, %32 : vector<16x128xf32>
    %c0_26 = arith.constant 0 : index
    %c0_27 = arith.constant 0 : index
    %34 = vector.load %arg8[%c0_26, %c0_27] : memref<16x128xf32, #tpu.memory_space<vmem>>, vector<16x128xf32>
    tpu.vector_store %arg8[%c0_26, %c0_27], %33 {strides = array<i32>} : memref<16x128xf32, #tpu.memory_space<vmem>>, vector<16x128xf32>,
    return
  }
  func.func @transform_0(%arg0: i32) -> (i32, i32) {
    %c0_i32 = arith.constant 0 : i32
    %c0_i32_0 = arith.constant 0 : i32
    return %arg0, %c0_i32 : i32, i32
  }
  func.func @transform_1(%arg0: i32) -> (i32, i32) {
    %c0_i32 = arith.constant 0 : i32
    %c0_i32_0 = arith.constant 0 : i32
    %c0_i32_1 = arith.constant 0 : i32
    return %c0_i32, %c0_i32_0 : i32, i32
  }
  func.func @transform_2(%arg0: i32) -> (i32, i32) {
    %c0_i32 = arith.constant 0 : i32
    %c0_i32_0 = arith.constant 0 : i32
    %c0_i32_1 = arith.constant 0 : i32
    return %c0_i32, %c0_i32_0 : i32, i32
  }
  func.func @transform_3(%arg0: i32) -> (i32, i32, i32) {
    %c0_i32 = arith.constant 0 : i32
    %c0_i32_0 = arith.constant 0 : i32
    %c0_i32_1 = arith.constant 0 : i32
    %c0_i32_2 = arith.constant 0 : i32
    return %c0_i32, %c0_i32_0, %c0_i32_1 : i32, i32, i32
  }
  func.func @transform_4(%arg0: i32) -> (i32, i32, i32) {
    %c0_i32 = arith.constant 0 : i32
    %c0_i32_0 = arith.constant 0 : i32
    %c0_i32_1 = arith.constant 0 : i32
    %c0_i32_2 = arith.constant 0 : i32
    return %c0_i32, %c0_i32_0, %c0_i32_1 : i32, i32, i32
  }
  func.func @transform_5(%arg0: i32) -> (i32, i32) {
    %c0_i32 = arith.constant 0 : i32
    %c0_i32_0 = arith.constant 0 : i32
    %c0_i32_1 = arith.constant 0 : i32
    return %c0_i32, %c0_i32_0 : i32, i32
  }
  func.func @transform_6(%arg0: i32) -> (i32, i32) {
    %c0_i32 = arith.constant 0 : i32
    %c0_i32_0 = arith.constant 0 : i32
    %c0_i32_1 = arith.constant 0 : i32
    return %c0_i32, %c0_i32_0 : i32, i32
  }
  func.func @transform_7(%arg0: i32) -> (i32, i32) {
    %c0_i32 = arith.constant 0 : i32
    %c0_i32_0 = arith.constant 0 : i32
    return %arg0, %c0_i32 : i32, i32
  }
}

</mosaic_0001>

<bundles_post_ra>
// kernel: tpu_custom_call.1
= control target key start
LH: loop header
LB: loop body
LE: loop exit
PB: predicated region body
PF: predicated region fallthrough
CT: control target
= control target key end

     0   :  { %12 = vsyncpa [#allocation3], 0  ;;  %s996_s0 = inlined_call_operand.hbm [shape: bf16[16,32], index: 0, kind: input, shape index: {}]   ;;  %s997_s1 = inlined_call_operand.hbm [shape: bf16[32,128], index: 1, kind: input, shape index: {}]   ;;  %s998_s2 = inlined_call_operand.vmem [shape: f32[1,128], index: 2, kind: input, shape index: {}]   ;;  %s999_s3 = inlined_call_operand.hbm [shape: bf16[2,128,128], index: 3, kind: input, shape index: {}]   ;;  %s1000_s4 = inlined_call_operand.vmem [shape: f32[2,1,128], index: 4, kind: input, shape index: {}]   ;;  %s1001_s5 = inlined_call_operand.hbm [shape: bf16[128,128], index: 5, kind: input, shape index: {}]   ;;  %s1002_s6 = inlined_call_operand.vmem [shape: f32[1,128], index: 6, kind: input, shape index: {}]   ;;  %s1003_s7 = inlined_call_operand.hbm [shape: f32[16,128], index: 7, kind: output, shape index: {}]  }
   0x1   :  { %13 = vsyncpa [#allocation6], 0 }
   0x2   :  { %14 = vsyncpa [#allocation9], 0 }
   0x3   :  { %15 = vsyncpa [#allocation4], 0  ;;  %s813_s24 = smov [#allocation5]   ;;  %s814_s26 = smov [#allocation2]  }
   0x4   :  { %s33_s25 = sshll.u32 %s813_s24, 4  ;;  %s21_s27 = sshll.u32 %s814_s26, 4  ;;  %s34_s25 = int_to_ptr.vmem [resolvable:$true] %s33_s25  ;;  %s864_s27 = int_to_ptr.vmem [resolvable:$true] %s21_s27 }
   0x5   :  { %s695_s30 = scalar_lea.hbm %s997_s1, 256 }
   0x6   :  { %p696_p0 = scmp.ne.s32.totalorder %s997_s1, %s695_s30  ;;  %p699_p1 = scmp.lt.u32.totalorder %s695_s30, %s997_s1 }
   0x8   :  { %p701_p2 = pnand %p699_p1, %p696_p0 }
   0xa   :  { %704 = shalt.err (!%p701_p2)
}
   0xb   :  { %s705_s12 = scalar_lea.vmem %s34_s25, 256  ;;  %p710_p4 = scmp.lt.s32.totalorder %s34_s25, %s34_s25 }
   0xc   :  { %p706_p3 = scmp.ne.s32.totalorder %s34_s25, %s705_s12  ;;  %p711_p5 = scmp.lt.s32.totalorder %s705_s12, %s705_s12 }
   0xe   :  { %p712_p6 = por %p711_p5, %p710_p4 }
  0x10   :  { %p713_p7 = pnand %p712_p6, %p706_p3 }
  0x12   :  { %716 = shalt.err (!%p713_p7)
}
  0x13   :  { %s815_s13 = smov 64   ;;  %s816_s14 = smov 4  }
  0x14   :  { %39 = dma.hbm_to_vmem [thread:$0]  %s997_s1, 256, %s34_s25, [#allocation6], %s815_s13, %s815_s13, %s816_s14  }
  0x15   :  { %s717_s19 = scalar_lea.hbm %s996_s0, 128 }
  0x16   :  { %p718_p8 = scmp.ne.s32.totalorder %s996_s0, %s717_s19  ;;  %p721_p9 = scmp.lt.u32.totalorder %s717_s19, %s996_s0 }
  0x18   :  { %p723_p10 = pnand %p721_p9, %p718_p8 }
  0x1a   :  { %726 = shalt.err (!%p723_p10)
}
  0x1b   :  { %s727_s24 = scalar_lea.vmem %s864_s27, 128  ;;  %p732_p12 = scmp.lt.s32.totalorder %s864_s27, %s864_s27 }
  0x1c   :  { %p728_p11 = scmp.ne.s32.totalorder %s864_s27, %s727_s24  ;;  %p733_p13 = scmp.lt.s32.totalorder %s727_s24, %s727_s24 }
  0x1e   :  { %p734_p0 = por %p733_p13, %p732_p12 }
  0x20   :  { %p735_p1 = pnand %p734_p0, %p728_p11 }
  0x22   :  { %738 = shalt.err (!%p735_p1)
}
  0x23   :  { %27 = dma.hbm_to_vmem [thread:$0]  %s996_s0, 128, %s864_s27, [#allocation3], %s815_s13, %s815_s13, %s816_s14  }
  0x24   :  { %s817_s26 = smov [#allocation7]   ;;  %s818_s29 = smov [#allocation8]  }
  0x25   :  { %s47_s28 = sshll.u32 %s817_s26, 4  ;;  %s61_s30 = sshll.u32 %s818_s29, 4  ;;  %s48_s28 = int_to_ptr.vmem [resolvable:$true] %s47_s28  ;;  %s901_s30 = int_to_ptr.vmem [resolvable:$true] %s61_s30 }
  0x26   :  { %s739_s10 = scalar_lea.hbm %s999_s3, 2048 }
  0x27   :  { %p740_p2 = scmp.ne.s32.totalorder %s999_s3, %s739_s10  ;;  %p743_p3 = scmp.lt.u32.totalorder %s739_s10, %s999_s3 }
  0x29   :  { %p745_p4 = pnand %p743_p3, %p740_p2 }
  0x2b   :  { %748 = shalt.err (!%p745_p4)
}
  0x2c   :  { %s749_s0 = scalar_lea.vmem %s48_s28, 2048  ;;  %p754_p6 = scmp.lt.s32.totalorder %s48_s28, %s48_s28 }
  0x2d   :  { %p750_p5 = scmp.ne.s32.totalorder %s48_s28, %s749_s0  ;;  %p755_p7 = scmp.lt.s32.totalorder %s749_s0, %s749_s0 }
  0x2f   :  { %p756_p8 = por %p755_p7, %p754_p6 }
  0x31   :  { %p757_p9 = pnand %p756_p8, %p750_p5 }
  0x33   :  { %760 = shalt.err (!%p757_p9)
}
  0x34   :  { %53 = dma.hbm_to_vmem [thread:$0]  %s999_s3, 2048, %s48_s28, [#allocation6], %s815_s13, %s815_s13, %s816_s14  }
  0x35   :  { %s761_s20 = scalar_lea.hbm %s1001_s5, 1024 }
  0x36   :  { %p762_p10 = scmp.ne.s32.totalorder %s1001_s5, %s761_s20  ;;  %p765_p11 = scmp.lt.u32.totalorder %s761_s20, %s1001_s5 }
  0x38   :  { %p767_p12 = pnand %p765_p11, %p762_p10 }
  0x3a   :  { %770 = shalt.err (!%p767_p12)
}
  0x3b   :  { %s771_s1 = scalar_lea.vmem %s901_s30, 1024  ;;  %p776_p0 = scmp.lt.s32.totalorder %s901_s30, %s901_s30 }
  0x3c   :  { %p772_p13 = scmp.ne.s32.totalorder %s901_s30, %s771_s1  ;;  %p777_p1 = scmp.lt.s32.totalorder %s771_s1, %s771_s1 }
  0x3e   :  { %p778_p2 = por %p777_p1, %p776_p0 }
  0x40   :  { %p779_p3 = pnand %p778_p2, %p772_p13 }
  0x42   :  { %782 = shalt.err (!%p779_p3)
}
  0x43   :  { %67 = dma.hbm_to_vmem [thread:$0]  %s1001_s5, 1024, %s901_s30, [#allocation9], %s815_s13, %s815_s13, %s816_s14  }
  0x44   :  { %805 = dma.done.wait [#allocation3], 128  }
  0x45   :  { %806 = vsyncadd [#allocation3], 4294967168 }
  0x46   :  { %807 = dma.done.wait [#allocation6], 2304  }
  0x47   :  { %808 = vsyncadd [#allocation6], 4294964992 }
  0x48   :  { %809 = dma.done.wait [#allocation9], 1024  }
  0x49   :  { %810 = vsyncadd [#allocation9], 4294966272  ;;  %v819_v0 = vmov 0.0   ;;  %vm820_vm0 = vmmov 0   ;;  %v668_v1 = vld [vmem:[#allocation5] sm:$0xff]   ;;  %v669_v2 = vld [vmem:[#allocation5 + $0x8] sm:$0xff]  }
  0x4a   :  { %589 = vmatprep.subr.bf16.mxu0 %v819_v0  ;;  %593 = vmatprep.mubr.msk.bf16.mxu0 %vm820_vm0, %v819_v0  ;;  %v671_v3 = vld [vmem:[#allocation7] sm:$0xff]   ;;  %v670_v4 = vld [vmem:[#allocation2] sm:$0xff]   ;;  %vm113_vm1 = vcmask 261120   ;;  %v673_v6 = vld [vmem:[#allocation7 + $0x10] sm:$0xff]   ;;  %s821_s8 = smov [#allocation10]  }
  0x4b   :  { %597 = vmatprep.subr.bf16.mxu1 %v819_v0  ;;  %613 = vmatprep.mubr.msk.bf16.mxu1 %vm820_vm0, %v819_v0  ;;  %v672_v5 = vld [vmem:[#allocation7 + $0x8] sm:$0xff]   ;;  %v674_v7 = vld [vmem:[#allocation7 + $0x18] sm:$0xff]   ;;  %v675_v8 = vld [vmem:[#allocation7 + $0x20] sm:$0xff]   ;;  %s512_s9 = sshll.u32 %s821_s8, 4  ;;  %s513_s9 = int_to_ptr.vmem [resolvable:$true] %s512_s9 }
  0x4c   :  { %590 = vmatpush3.bf16.msra.mxu0 %v668_v1  ;;  %598 = vmatpush3.bf16.msra.mxu1 %v671_v3  ;;  %v676_v9 = vld [vmem:[#allocation7 + $0x28] sm:$0xff]   ;;  %v677_v10 = vld [vmem:[#allocation7 + $0x30] sm:$0xff]   ;;  %v678_v11 = vld [vmem:[#allocation7 + $0x38] sm:$0xff]   ;;  %p788_p5 = scmp.lt.s32.totalorder %s513_s9, %s513_s9 }
  0x4d   :  { %591 = vmatprep.subr.bf16.mxu0 %v819_v0  ;;  %599 = vmatprep.subr.bf16.mxu1 %v819_v0  ;;  %v679_v12 = vld [vmem:[#allocation7 + $0x40] sm:$0xff]   ;;  %v680_v13 = vld [vmem:[#allocation7 + $0x48] sm:$0xff]   ;;  %v681_v14 = vld [vmem:[#allocation7 + $0x50] sm:$0xff]  }
  0x4e   :  { %v682_v15 = vld [vmem:[#allocation7 + $0x58] sm:$0xff]   ;;  %v683_v16 = vld [vmem:[#allocation7 + $0x60] sm:$0xff]   ;;  %v684_v17 = vld [vmem:[#allocation7 + $0x68] sm:$0xff]  }
  0x4f   :  { %v526_v18 = vld [vmem:[%s998_s2] ss:$0 sm:$0xff]  ;;  %v685_v28 = vld [vmem:[#allocation7 + $0x70] sm:$0xff]   ;;  %v686_v29 = vld [vmem:[#allocation7 + $0x78] sm:$0xff]  }
  0x50   :  { %592 = vmatpush3.bf16.msra.mxu0 %v669_v2  ;;  %600 = vmatpush3.bf16.msra.mxu1 %v672_v5  ;;  %v687_v30 = vld [vmem:[#allocation8] sm:$0xff]   ;;  %v688_v31 = vld [vmem:[#allocation8 + $0x8] sm:$0xff]   ;;  %v689_v32 = vld [vmem:[#allocation8 + $0x10] sm:$0xff]  }
  0x51   :  { %617 = vmatprep.subr.bf16.mxu0 %v819_v0  ;;  %601 = vmatprep.subr.bf16.mxu1 %v819_v0  ;;  %v690_v33 = vld [vmem:[#allocation8 + $0x18] sm:$0xff]   ;;  %v691_v34 = vld [vmem:[#allocation8 + $0x20] sm:$0xff]   ;;  %v692_v35 = vld [vmem:[#allocation8 + $0x28] sm:$0xff]  }
  0x52   :  { %v531_v36 = vld [vmem:[%s1000_s4] ss:$0 sm:$0xff]  ;;  %v693_v46 = vld [vmem:[#allocation8 + $0x30] sm:$0xff]   ;;  %v694_v47 = vld [vmem:[#allocation8 + $0x38] sm:$0xff]  }
  0x53   :  { %594 = vmatmul.mubr.msk.bf16.vlgmr.msra.gmra.mrb[0].mxu0 %vm113_vm1, %v670_v4  ;;  %v541_v48 = vld [vmem:[%s1000_s4 + $0x1] ss:$0 sm:$0xff]  ;;  %v550_v58 = vld [vmem:[%s1002_s6] ss:$0 sm:$0xff]  ;;  %s783_s4 = scalar_lea.vmem %s513_s9, 256 }
  0x54   :  { %633 = vmatprep.mubr.msk.bf16.mxu0 %vm820_vm0, %v819_v0  ;;  %602 = vmatpush3.bf16.msra.mxu1 %v673_v6  ;;  %p784_p4 = scmp.ne.s32.totalorder %s513_s9, %s783_s4  ;;  %p789_p6 = scmp.lt.s32.totalorder %s783_s4, %s783_s4 }
  0x55   :  { %603 = vmatprep.subr.bf16.mxu1 %v819_v0  ;;  %618 = vmatpush3.bf16.msra.mxu0 %v679_v12 }
  0x56   :  { %619 = vmatprep.subr.bf16.mxu0 %v819_v0  ;;  %p790_p7 = por %p789_p6, %p788_p5 }
  0x58   :  { %604 = vmatpush3.bf16.msra.mxu1 %v674_v7  ;;  %p791_p8 = pnand %p790_p7, %p784_p4 }
  0x59   :  { %605 = vmatprep.subr.bf16.mxu1 %v819_v0  ;;  %620 = vmatpush3.bf16.msra.mxu0 %v680_v13 }
  0x5a   :  { %621 = vmatprep.subr.bf16.mxu0 %v819_v0 }
  0x5c   :  { %606 = vmatpush3.bf16.msra.mxu1 %v675_v8 }
  0x5d   :  { %607 = vmatprep.subr.bf16.mxu1 %v819_v0  ;;  %622 = vmatpush3.bf16.msra.mxu0 %v681_v14 }
  0x5e   :  { %623 = vmatprep.subr.bf16.mxu0 %v819_v0 }
  0x60   :  { %608 = vmatpush3.bf16.msra.mxu1 %v676_v9 }
  0x61   :  { %609 = vmatprep.subr.bf16.mxu1 %v819_v0  ;;  %624 = vmatpush3.bf16.msra.mxu0 %v682_v15 }
  0x62   :  { %625 = vmatprep.subr.bf16.mxu0 %v819_v0 }
  0x64   :  { %610 = vmatpush3.bf16.msra.mxu1 %v677_v10 }
  0x65   :  { %611 = vmatprep.subr.bf16.mxu1 %v819_v0  ;;  %626 = vmatpush3.bf16.msra.mxu0 %v683_v16 }
  0x66   :  { %627 = vmatprep.subr.bf16.mxu0 %v819_v0 }
  0x68   :  { %612 = vmatpush3.bf16.msra.mxu1 %v678_v11 }
  0x69   :  { %637 = vmatprep.subr.bf16.mxu1 %v819_v0  ;;  %628 = vmatpush3.bf16.msra.mxu0 %v684_v17 }
  0x6a   :  { %629 = vmatprep.subr.bf16.mxu0 %v819_v0 }
  0x6d   :  { %630 = vmatpush3.bf16.msra.mxu0 %v685_v28 }
  0x6e   :  { %631 = vmatprep.subr.bf16.mxu0 %v819_v0 }
  0x71   :  { %632 = vmatpush3.bf16.msra.mxu0 %v686_v29 }
 0x126   :  { %v151_v19 = vpop.f32.mrb[0].mxu0 }
 0x127   :  { %v152_v20 = vadd.f32 %v526_v18, %v151_v19  ;;  %v595_v21 = vpop.f32.mrb[1].mxu0 }
 0x128   :  { %v154_v22 = vpop.f32.mrb[2].mxu0 }
 0x129   :  { %v155_v23 = vadd.f32 %v526_v18, %v154_v22  ;;  %v596_v24 = vpop.f32.mrb[3].mxu0  ;;  %v158_v25 = vmax.f32 %v152_v20, 0.0 }
 0x12b   :  { %v159_v26 = vmax.f32 %v155_v23, 0.0 }
 0x12d   :  { %v160_v27 = vpack.c.bf16 %v159_v26, %v158_v25 }
 0x12f   :  { %614 = vmatmul.mubr.bf16.vlgmr.msra.gmra.mrb[0].mxu1 %v160_v27 }
 0x130   :  { %653 = vmatprep.mubr.msk.bf16.mxu1 %vm820_vm0, %v819_v0  ;;  %638 = vmatpush3.bf16.msra.mxu1 %v687_v30 }
 0x131   :  { %639 = vmatprep.subr.bf16.mxu1 %v819_v0 }
 0x134   :  { %640 = vmatpush3.bf16.msra.mxu1 %v688_v31 }
 0x135   :  { %641 = vmatprep.subr.bf16.mxu1 %v819_v0 }
 0x138   :  { %642 = vmatpush3.bf16.msra.mxu1 %v689_v32 }
 0x139   :  { %643 = vmatprep.subr.bf16.mxu1 %v819_v0 }
 0x13c   :  { %644 = vmatpush3.bf16.msra.mxu1 %v690_v33 }
 0x13d   :  { %645 = vmatprep.subr.bf16.mxu1 %v819_v0 }
 0x140   :  { %646 = vmatpush3.bf16.msra.mxu1 %v691_v34 }
 0x141   :  { %647 = vmatprep.subr.bf16.mxu1 %v819_v0 }
 0x144   :  { %648 = vmatpush3.bf16.msra.mxu1 %v692_v35 }
 0x145   :  { %649 = vmatprep.subr.bf16.mxu1 %v819_v0 }
 0x148   :  { %650 = vmatpush3.bf16.msra.mxu1 %v693_v46 }
 0x149   :  { %651 = vmatprep.subr.bf16.mxu1 %v819_v0 }
 0x14c   :  { %652 = vmatpush3.bf16.msra.mxu1 %v694_v47 }
 0x202   :  { %v266_v37 = vpop.f32.mrb[0].mxu1 }
 0x203   :  { %v267_v38 = vadd.f32 %v531_v36, %v266_v37  ;;  %v615_v39 = vpop.f32.mrb[1].mxu1 }
 0x204   :  { %v269_v40 = vpop.f32.mrb[2].mxu1 }
 0x205   :  { %v270_v41 = vadd.f32 %v531_v36, %v269_v40  ;;  %v616_v42 = vpop.f32.mrb[3].mxu1  ;;  %v273_v43 = vmax.f32 %v267_v38, 0.0 }
 0x207   :  { %v274_v44 = vmax.f32 %v270_v41, 0.0 }
 0x209   :  { %v275_v45 = vpack.c.bf16 %v274_v44, %v273_v43 }
 0x20b   :  { %634 = vmatmul.mubr.bf16.vlgmr.msra.gmra.mrb[4].mxu0 %v275_v45 }
 0x2de   :  { %v383_v49 = vpop.f32.mrb[4].mxu0 }
 0x2df   :  { %v384_v50 = vadd.f32 %v541_v48, %v383_v49  ;;  %v635_v51 = vpop.f32.mrb[5].mxu0 }
 0x2e0   :  { %v386_v52 = vpop.f32.mrb[6].mxu0 }
 0x2e1   :  { %v387_v53 = vadd.f32 %v541_v48, %v386_v52  ;;  %v636_v54 = vpop.f32.mrb[7].mxu0  ;;  %v390_v55 = vmax.f32 %v384_v50, 0.0 }
 0x2e3   :  { %v391_v56 = vmax.f32 %v387_v53, 0.0 }
 0x2e5   :  { %v392_v57 = vpack.c.bf16 %v391_v56, %v390_v55 }
 0x2e7   :  { %654 = vmatmul.mubr.bf16.vlgmr.msra.gmra.mrb[4].mxu1 %v392_v57 }
 0x3ba   :  { %v498_v59 = vpop.f32.mrb[4].mxu1 }
 0x3bb   :  { %v499_v60 = vadd.f32 %v550_v58, %v498_v59  ;;  %v655_v61 = vpop.f32.mrb[5].mxu1 }
 0x3bc   :  { %v501_v62 = vpop.f32.mrb[6].mxu1 }
 0x3bd   :  { %505 = vst [vmem:[#allocation10] sm:$0xff] %v499_v60  ;;  %v502_v63 = vadd.f32 %v550_v58, %v501_v62  ;;  %v656_v0 = vpop.f32.mrb[7].mxu1 }
 0x3bf   :  { %506 = vst [vmem:[#allocation10 + $0x8] sm:$0xff] %v502_v63 }
 0x3c0   :  { %794 = shalt.err (!%p791_p8)
}
 0x3c1   :  { %s795_s11 = scalar_lea.hbm %s1003_s7, 256 }
 0x3c2   :  { %p796_p9 = scmp.ne.s32.totalorder %s1003_s7, %s795_s11  ;;  %p799_p10 = scmp.lt.u32.totalorder %s795_s11, %s1003_s7 }
 0x3c4   :  { %p801_p11 = pnand %p799_p10, %p796_p9 }
 0x3c6   :  { %804 = shalt.err (!%p801_p11)
}
 0x3c7   :  { %s822_s27 = smov 128   ;;  %s823_s17 = smov 8  }
 0x3c8   :  { %518 = dma.vmem_to_hbm [thread:$0]  %s513_s9, 256, %s1003_s7, [#allocation4], %s822_s27, %s822_s27, %s823_s17  }
 0x3c9   :  { %811 = dma.done.wait [#allocation4], 256  }
 0x3ca   :  { %812 = vsyncadd [#allocation4], 4294967040 }
 0x3cb   :  { %522 = vsyncpa [#allocation3], 1 }
 0x3cc   :  { %523 = vsyncpa [#allocation6], 1 }
 0x3cd   :  { %524 = vsyncpa [#allocation9], 1 }
 0x3ce   :  { %525 = vsyncpa [#allocation4], 1 }

</bundles_post_ra>
